<compile_context>
chip_gen: v5e
topology: v5e:2x2
jax: 0.10.0
libtpu: 0.0.40
codegen_flags: <defaults>
</compile_context>

<pallas_src>
import jax
import jax.numpy as jnp
from jax.experimental import pallas as pl
from jax.experimental.pallas import tpu as pltpu


def _h_sigmoid_kernel(x_ref, o_ref):
    x = x_ref[...]
    # relu6(x + 3) / 6
    o_ref[...] = (jnp.clip(x + 3.0, 0.0, 6.0) * (1.0 / 6.0)).astype(o_ref.dtype)


def _round_up(a, b):
    return pl.cdiv(a, b) * b


def h_sigmoid(x, *, target_block_bytes=2 * 1024 * 1024):
    """Elementwise hard-sigmoid: relu6(x + 3) / 6, matching the PyTorch module."""
    orig_shape = x.shape
    dtype = x.dtype
    n = x.size
    itemsize = jnp.dtype(dtype).itemsize

    # dtype-aware sublane multiple: f32 -> 8, bf16 -> 16, int8/fp8 -> 32.
    sublane = max(8, 32 // itemsize)

    # Wide lane-dense slab; shrink lane width only for tiny inputs so the slab
    # still has >= sublane rows without excessive padding.
    lane = 1024
    while lane > 128 and n < lane * sublane:
        lane //= 2

    n_rows = pl.cdiv(n, lane)

    # ~2 MiB blocks (in bytes, so bf16 gets 2x the rows of f32 for free).
    target_rows = max(sublane,
                      _round_up(target_block_bytes // (itemsize * lane), sublane))
    grid_steps = pl.cdiv(n_rows, target_rows)
    if grid_steps > 1 and grid_steps % 2:
        grid_steps += 1  # even step count -> balanced split across v7x's 2 TCs
    block_rows = _round_up(pl.cdiv(n_rows, grid_steps), sublane)
    n_rows_padded = grid_steps * block_rows

    flat = jnp.reshape(x, (-1,))
    pad = n_rows_padded * lane - n
    if pad:
        # Single 1-D pad (one extra HBM copy, only on the ragged path); the
        # padded tail evaluates to 0.5 and is sliced off below.
        flat = jnp.pad(flat, (0, pad))
    x2d = jnp.reshape(flat, (n_rows_padded, lane))  # free reshape (contiguous)

    out2d = pl.pallas_call(
        _h_sigmoid_kernel,
        out_shape=jax.ShapeDtypeStruct((n_rows_padded, lane), dtype),
        grid_spec=pltpu.PrefetchScalarGridSpec(
            num_scalar_prefetch=0,
            grid=(grid_steps,),
            in_specs=[pl.BlockSpec((block_rows, lane), lambda i: (i, 0))],
            out_specs=pl.BlockSpec((block_rows, lane), lambda i: (i, 0)),
        ),
        compiler_params=pltpu.CompilerParams(
            dimension_semantics=("parallel",),
        ),
    )(x2d)

    if pad:
        return jnp.reshape(jnp.reshape(out2d, (-1,))[:n], orig_shape)
    return jnp.reshape(out2d, orig_shape)


if __name__ == "__main__":
    key = jax.random.PRNGKey(0)
    # NCHW input, consistent with how this module is used inside conv blocks.
    x = jax.random.normal(key, (2, 4, 16, 16), dtype=jnp.float32) * 4.0

    out = h_sigmoid(x)
    out = jax.block_until_ready(out)

    # reference check in plain JAX
    ref = jnp.clip(x + 3.0, 0.0, 6.0) / 6.0
    assert out.shape == x.shape and out.dtype == x.dtype
    assert jnp.max(jnp.abs(out - ref)) < 1e-6

    print("KERNEL_OK")
</pallas_src>

<mosaic_0001>
module attributes {stable_mosaic.version = 11 : i64} {
  func.func @_h_sigmoid_kernel(%arg0: i32, %arg1: memref<8x256xf32, #tpu.memory_space<vmem>>, %arg2: memref<8x256xf32, #tpu.memory_space<vmem>>) attributes {dimension_semantics = [#tpu.dimension_semantics<parallel>], iteration_bounds = array<i64: 1>, scalar_prefetch = 0 : i64, scratch_operands = 0 : i64, tpu.core_type = #tpu.core_type<tc>, window_params = [{transform_indices = @transform_0, window_bounds = array<i64: 8, 256>}, {transform_indices = @transform_1, window_bounds = array<i64: 8, 256>}]} {
    %c0 = arith.constant 0 : index
    %c0_0 = arith.constant 0 : index
    %0 = vector.load %arg1[%c0, %c0_0] : memref<8x256xf32, #tpu.memory_space<vmem>>, vector<8x256xf32>
    %cst = arith.constant 3.000000e+00 : f32
    %1 = vector.broadcast %cst : f32 to vector<8x256xf32>
    %2 = arith.addf %0, %1 : vector<8x256xf32>
    %cst_1 = arith.constant 0.000000e+00 : f32
    %cst_2 = arith.constant 6.000000e+00 : f32
    %3 = vector.broadcast %cst_1 : f32 to vector<8x256xf32>
    %4 = arith.maximumf %3, %2 : vector<8x256xf32>
    %5 = vector.broadcast %cst_2 : f32 to vector<8x256xf32>
    %6 = arith.minimumf %5, %4 : vector<8x256xf32>
    %cst_3 = arith.constant 0.166666672 : f32
    %7 = vector.broadcast %cst_3 : f32 to vector<8x256xf32>
    %8 = arith.mulf %6, %7 : vector<8x256xf32>
    %c0_4 = arith.constant 0 : index
    %c0_5 = arith.constant 0 : index
    %9 = vector.load %arg2[%c0_4, %c0_5] : memref<8x256xf32, #tpu.memory_space<vmem>>, vector<8x256xf32>
    tpu.vector_store %arg2[%c0_4, %c0_5], %8 {strides = array<i32>} : memref<8x256xf32, #tpu.memory_space<vmem>>, vector<8x256xf32>,
    return
  }
  func.func @transform_0(%arg0: i32) -> (i32, i32) {
    %c0_i32 = arith.constant 0 : i32
    %c0_i32_0 = arith.constant 0 : i32
    return %arg0, %c0_i32 : i32, i32
  }
  func.func @transform_1(%arg0: i32) -> (i32, i32) {
    %c0_i32 = arith.constant 0 : i32
    %c0_i32_0 = arith.constant 0 : i32
    return %arg0, %c0_i32 : i32, i32
  }
}

</mosaic_0001>

<bundles_post_ra>
// kernel: tpu_custom_call.1
= control target key start
LH: loop header
LB: loop body
LE: loop exit
PB: predicated region body
PF: predicated region fallthrough
CT: control target
= control target key end

     0   :  { %6 = vsyncpa [#allocation3], 0  ;;  %s124_s0 = inlined_call_operand.hbm [shape: f32[8,256], index: 0, kind: input, shape index: {}]   ;;  %s125_s1 = inlined_call_operand.hbm [shape: f32[8,256], index: 1, kind: output, shape index: {}]  }
   0x1   :  { %7 = vsyncpa [#allocation4], 0  ;;  %s13_s8 = sshll.u32 %s124_s0, 4  ;;  %s106_s9 = smov [#allocation2]   ;;  %s14_s8 = int_to_ptr.hbm [resolvable:$true] %s13_s8 }
   0x2   :  { %s15_s10 = sshll.u32 %s106_s9, 4  ;;  %s16_s10 = int_to_ptr.vmem [resolvable:$true] %s15_s10 }
   0x3   :  { %18 = dma.hbm_to_vmem [thread:$0]  %s14_s8, 256, %s16_s10, [#allocation3]  }
   0x4   :  { %102 = dma.done.wait [#allocation3], 256  }
   0x5   :  { %103 = vsyncadd [#allocation3], 4294967040  ;;  %v23_v0 = vld [vmem:[#allocation2] sm:$0xff]  ;;  %v24_v1 = vld [vmem:[#allocation2 + $0x8] sm:$0xff]  ;;  %s107_s11 = smov [#allocation5]   ;;  %s42_s0 = sshll.u32 %s125_s1, 4  ;;  %s43_s0 = int_to_ptr.hbm [resolvable:$true] %s42_s0 }
   0x6   :  { %v25_v2 = vadd.f32 3.0, %v23_v0  ;;  %v26_v3 = vadd.f32 3.0, %v24_v1  ;;  %s40_s12 = sshll.u32 %s107_s11, 4  ;;  %s41_s12 = int_to_ptr.vmem [resolvable:$true] %s40_s12 }
   0x8   :  { %v27_v4 = vmax.f32 %v25_v2, 0.0  ;;  %v28_v5 = vmax.f32 %v26_v3, 0.0 }
   0xa   :  { %v29_v6 = vmin.f32 %v27_v4, 6.0  ;;  %v30_v7 = vmin.f32 %v28_v5, 6.0 }
   0xc   :  { %v31_v8 = vmul.f32 0.16666667, %v29_v6  ;;  %v32_v9 = vmul.f32 0.16666667, %v30_v7 }
   0xe   :  { %33 = vst [vmem:[#allocation5] sm:$0xff] %v31_v8 }
   0xf   :  { %34 = vst [vmem:[#allocation5 + $0x8] sm:$0xff] %v32_v9 }
  0x10   :  { %45 = dma.vmem_to_hbm [thread:$0]  %s41_s12, 256, %s43_s0, [#allocation4]  }
  0x11   :  { %104 = dma.done.wait [#allocation4], 256  }
  0x12   :  { %105 = vsyncadd [#allocation4], 4294967040 }
  0x13   :  { %50 = vsyncpa [#allocation3], 1 }
  0x14   :  { %51 = vsyncpa [#allocation4], 1 }

</bundles_post_ra>
